<compile_context>
chip_gen: v6e
topology: v6e:2x2x1
jax: 0.10.0
libtpu: 0.0.40
codegen_flags: <defaults>
</compile_context>

<pallas_src>
import math

import jax
import jax.numpy as jnp
from jax.experimental import pallas as pl
from jax.experimental.pallas import tpu as pltpu


# --------------------------------------------------------------------------- kernel

def _make_film_kernel(tile_l, h):
    """FiLM kernel over a lane-dense (1, S, tile_l*h) block.

    gamma/beta arrive at natural size (1, 1, h); they are broadcast to the
    lane-tiled (1, 1, tile_l*h) form once per batch (chunk index == 0) into
    f32 VMEM scratch; every grid step is then a pure-VPU FMA in f32 whose
    result is cast back to the feature-map dtype for the store."""

    def film_kernel(fm_ref, g_ref, b_ref, out_ref, gexp_ref, bexp_ref):
        @pl.when(pl.program_id(1) == 0)            # first chunk block of this batch
        def _expand_gamma_beta():
            g = g_ref[...].astype(jnp.float32)     # (1, 1, h)
            b = b_ref[...].astype(jnp.float32)
            for t in range(tile_l):                # static loop, tile_l <= 128
                gexp_ref[:, :, t * h:(t + 1) * h] = g
                bexp_ref[:, :, t * h:(t + 1) * h] = b

        fm = fm_ref[...].astype(jnp.float32)       # f32 math even for bf16 I/O
        out_ref[...] = (fm * gexp_ref[...] + bexp_ref[...]).astype(out_ref.dtype)

    return film_kernel


# --------------------------------------------------------------------------- tiling

def _round_up(x, m):
    return -(-x // m) * m


def _sublane(itemsize):
    return {4: 8, 2: 16, 1: 32}.get(itemsize, 8)


def _pick_tile_l(L, H):
    """Smallest tile_l with tile_l | L and (tile_l * H) % 128 == 0 (lane-dense)."""
    r = 128 // math.gcd(H, 128)
    if L % r == 0:
        return r
    # TODO(synk): if L has no divisor making tile_l*H a multiple of 128, the
    # kernel still runs with tile_l=1 (TILE=H) but sub-128-lane stores are masked.
    return 1


def _vmem_limit_bytes():
    """Scoped-VMEM limit derived from the actual chip (v5e/v6e: 128 MiB,
    v7x: 64 MiB per TensorCore), leaving ~25% headroom for compiler scratch."""
    try:
        cap = int(pltpu.get_tpu_info().vmem_capacity_bytes)
    except Exception:
        cap = 64 << 20                             # conservative: v7x per-TC VMEM
    return min((cap * 3) // 4, 96 << 20)


def _pick_block_rows(n_chunks, tile, h, itemsize, budget):
    """Rows (along the chunk axis) per FiLM block, budgeted against real VMEM:
    counts sublane padding, x2 double buffering of both the streaming input
    and the output, the resident gamma/beta blocks, and the f32 expansion
    scratch.  Never falls back to the whole array in one block."""
    sub = _sublane(itemsize)
    if n_chunks <= sub:
        return n_chunks                            # block dim == full array dim

    lane_t = _round_up(tile, 128)
    fixed = (2 * 2 * 8 * _round_up(h, 128) * 4     # gamma/beta blocks (f32, x2 buffers)
             + 2 * 8 * lane_t * 4)                 # gexp/bexp scratch (f32)
    per_row = 2 * 2 * lane_t * itemsize            # fm + out, double-buffered
    rows = (budget - fixed) // per_row if budget > fixed else 0
    rows = max(sub, (rows // sub) * sub)
    rows = min(rows, _round_up(n_chunks, sub))
    if rows >= n_chunks:
        return n_chunks
    # Prefer a block height that divides n_chunks exactly (no ragged last
    # block); the bounded downward scan keeps setup O(1).
    for cand in range(rows, max(sub, rows - 64 * sub) - 1, -sub):
        if n_chunks % cand == 0:
            return cand
    return rows                                    # ragged last block is masked by Pallas


# --------------------------------------------------------------------------- wrapper

def metalm_layer(feature_maps, context, params, w_shared=None, *,
                 block_bytes_budget=None):
    """Forward pass of MetaLMlayer.

    feature_maps: (B, L, H);  context: (B, M)
    params: PyTorch-layout generator weights:
        w1 (n_hid, M), b1 (n_hid,), w2 (n_hid//4, n_hid), b2 (n_hid//4,),
        w3 (2*H, n_hid//4), b3 (2*H,)
    w_shared: optional [w1, w2] overriding the stored weights (module semantics).
    Returns (output, new_w_shared) with output (B, L, H) and
    new_w_shared = [linear1.weight, linear2.weight].
    """
    B, L, H = feature_maps.shape
    Bc, _ = context.shape
    assert Bc == B, "batch mismatch between feature_maps and context"

    w1 = w_shared[0] if w_shared is not None else params["w1"]
    w2 = w_shared[1] if w_shared is not None else params["w2"]
    w3, b3 = params["w3"], params["b3"]
    assert w3.shape[0] == 2 * H, "generator output width must equal 2 * hidden_size"

    # ---- generator: tiny 3-layer sigmoid MLP.  Deliberately left to plain XLA
    # (perf review): its FLOPs/bytes are negligible next to the FiLM stream and
    # a dedicated pallas_call was pure launch + DMA overhead.
    h = jax.nn.sigmoid(context.astype(jnp.float32) @ w1.T + params["b1"])
    h = jax.nn.sigmoid(h @ w2.T + params["b2"])
    prm = jax.nn.sigmoid(h @ w3.T + b3)                     # (B, 2H), f32
    gammas = prm[:, :H].reshape(B, 1, H)                    # stay f32 for in-kernel math
    betas = prm[:, H:].reshape(B, 1, H)

    # ---- FiLM tiling: (B, L, H) -> (B, n_chunks, TILE), TILE = tile_l*H lane-dense.
    tile_l = _pick_tile_l(L, H)
    tile = tile_l * H
    n_chunks = L // tile_l
    fm3 = feature_maps.reshape(B, n_chunks, tile)           # free, contiguous

    itemsize = jnp.dtype(feature_maps.dtype).itemsize
    vmem_limit = _vmem_limit_bytes()
    budget = (block_bytes_budget if block_bytes_budget is not None
              else (vmem_limit * 3) // 5)
    rows = _pick_block_rows(n_chunks, tile, H, itemsize, budget)
    grid = (B, pl.cdiv(n_chunks, rows))

    out3 = pl.pallas_call(
        _make_film_kernel(tile_l, H),
        out_shape=jax.ShapeDtypeStruct((B, n_chunks, tile), feature_maps.dtype),
        grid=grid,
        in_specs=[
            pl.BlockSpec((1, rows, tile), lambda b, c: (b, c, 0)),  # streaming fm tiles
            pl.BlockSpec((1, 1, H), lambda b, c: (b, 0, 0)),        # gamma (resident/batch)
            pl.BlockSpec((1, 1, H), lambda b, c: (b, 0, 0)),        # beta  (resident/batch)
        ],
        out_specs=pl.BlockSpec((1, rows, tile), lambda b, c: (b, c, 0)),
        scratch_shapes=[pltpu.VMEM((1, 1, tile), jnp.float32),      # expanded gamma
                        pltpu.VMEM((1, 1, tile), jnp.float32)],     # expanded beta
        compiler_params=pltpu.CompilerParams(
            dimension_semantics=("parallel", "arbitrary"),
            vmem_limit_bytes=vmem_limit),
        cost_estimate=pl.CostEstimate(
            flops=2 * B * L * H,
            transcendentals=0,
            bytes_accessed=2 * B * L * H * itemsize + 4 * B * H * 4),
    )(fm3, gammas, betas)

    output = out3.reshape(B, L, H)
    # The module also returns [linear1.weight, linear2.weight].
    return output, [w1, w2]


# --------------------------------------------------------------------------- helpers

def init_params(key, n_metadata, n_channels, n_hid=64):
    """Deterministic init mimicking nn.Linear's U(-1/sqrt(fan_in), 1/sqrt(fan_in))."""
    ks = jax.random.split(key, 6)

    def lin(kw, kb, fan_in, fan_out):
        bound = 1.0 / jnp.sqrt(fan_in)
        w = jax.random.uniform(kw, (fan_out, fan_in), jnp.float32, -bound, bound)
        b = jax.random.uniform(kb, (fan_out,), jnp.float32, -bound, bound)
        return w, b

    w1, b1 = lin(ks[0], ks[1], n_metadata, n_hid)
    w2, b2 = lin(ks[2], ks[3], n_hid, n_hid // 4)
    w3, b3 = lin(ks[4], ks[5], n_hid // 4, n_channels * 2)
    return {"w1": w1, "b1": b1, "w2": w2, "b2": b2, "w3": w3, "b3": b3}


def metalm_reference(feature_maps, context, p):
    """Plain-JAX reference replicating the PyTorch forward exactly."""
    sig = jax.nn.sigmoid
    h = sig(context @ p["w1"].T + p["b1"])
    h = sig(h @ p["w2"].T + p["b2"])
    prm = sig(h @ p["w3"].T + p["b3"])                      # (B, 2H)
    _, _, H = feature_maps.shape
    gammas = prm[:, None, :H]
    betas = prm[:, None, H:]
    return gammas * feature_maps + betas


# --------------------------------------------------------------------------- demo

if __name__ == "__main__":
    # Module-consistent small shapes: n_metadata=8, n_channels == hidden_size H=32.
    B, L, H, M = 2, 64, 32, 8

    key = jax.random.PRNGKey(0)
    k_fm, k_ctx, k_p = jax.random.split(key, 3)
    feature_maps = jax.random.normal(k_fm, (B, L, H), dtype=jnp.float32)
    context = jax.random.normal(k_ctx, (B, M), dtype=jnp.float32)
    params = init_params(k_p, n_metadata=M, n_channels=H, n_hid=64)

    ref = metalm_reference(feature_maps, context, params)

    # 1) default (auto-sized blocks), under jit.
    out, new_w_shared = jax.jit(metalm_layer)(feature_maps, context, params)
    out = jax.block_until_ready(out)
    assert out.shape == (B, L, H)
    assert len(new_w_shared) == 2
    assert jnp.allclose(out, ref, atol=1e-4, rtol=1e-4), "mismatch vs reference (default)"

    # 2) tiny forced block budget -> multi-step chunk grid; exercises the
    #    once-per-batch gamma/beta expansion and scratch reuse across chunk steps.
    out_small, _ = metalm_layer(feature_maps, context, params, block_bytes_budget=1)
    out_small = jax.block_until_ready(out_small)
    assert jnp.allclose(out_small, ref, atol=1e-4, rtol=1e-4), \
        "mismatch vs reference (small blocks)"

    # 3) bf16 feature maps: bf16 HBM I/O, f32 FiLM math in-kernel.
    fm_bf16 = feature_maps.astype(jnp.bfloat16)
    out_bf16, _ = metalm_layer(fm_bf16, context, params)
    out_bf16 = jax.block_until_ready(out_bf16)
    ref_bf16 = metalm_reference(fm_bf16.astype(jnp.float32), context, params)
    assert out_bf16.dtype == jnp.bfloat16
    assert jnp.allclose(out_bf16.astype(jnp.float32), ref_bf16, atol=2e-2, rtol=2e-2), \
        "mismatch vs reference (bf16)"

    print("KERNEL_OK")
</pallas_src>

<mosaic_0001>
module attributes {stable_mosaic.version = 11 : i64} {
  func.func @film_kernel(%arg0: i32, %arg1: i32, %arg2: memref<1x16x128xf32, #tpu.memory_space<vmem>>, %arg3: memref<1x1x32xf32, #tpu.memory_space<vmem>>, %arg4: memref<1x1x32xf32, #tpu.memory_space<vmem>>, %arg5: memref<1x16x128xf32, #tpu.memory_space<vmem>>, %arg6: memref<1x1x128xf32, #tpu.memory_space<vmem>>, %arg7: memref<1x1x128xf32, #tpu.memory_space<vmem>>) attributes {dimension_semantics = [#tpu.dimension_semantics<parallel>, #tpu.dimension_semantics<arbitrary>], iteration_bounds = array<i64: 2, 1>, scalar_prefetch = 0 : i64, scratch_operands = 2 : i64, tpu.core_type = #tpu.core_type<tc>, window_params = [{transform_indices = @transform_0, window_bounds = array<i64: 1, 16, 128>}, {transform_indices = @transform_1, window_bounds = array<i64: 1, 1, 32>}, {transform_indices = @transform_2, window_bounds = array<i64: 1, 1, 32>}, {transform_indices = @transform_3, window_bounds = array<i64: 1, 16, 128>}]} {
    %c0_i32 = arith.constant 0 : i32
    %0 = arith.cmpi eq, %arg1, %c0_i32 : i32
    %1 = arith.extui %0 : i1 to i32
    %c0_i32_0 = arith.constant 0 : i32
    %2 = arith.cmpi ne, %1, %c0_i32_0 : i32
    scf.if %2 {
      %c0_12 = arith.constant 0 : index
      %c0_13 = arith.constant 0 : index
      %c0_14 = arith.constant 0 : index
      %11 = vector.load %arg3[%c0_12, %c0_13, %c0_14] : memref<1x1x32xf32, #tpu.memory_space<vmem>>, vector<1x1x32xf32>
      %c0_15 = arith.constant 0 : index
      %c0_16 = arith.constant 0 : index
      %c0_17 = arith.constant 0 : index
      %12 = vector.load %arg4[%c0_15, %c0_16, %c0_17] : memref<1x1x32xf32, #tpu.memory_space<vmem>>, vector<1x1x32xf32>
      %c0_18 = arith.constant 0 : index
      %c0_19 = arith.constant 0 : index
      %c0_20 = arith.constant 0 : index
      %13 = vector.load %arg6[%c0_18, %c0_19, %c0_20] : memref<1x1x128xf32, #tpu.memory_space<vmem>>, vector<1x1x32xf32>
      tpu.vector_store %arg6[%c0_18, %c0_19, %c0_20], %11 {strides = array<i32>} : memref<1x1x128xf32, #tpu.memory_space<vmem>>, vector<1x1x32xf32>,
      %c0_21 = arith.constant 0 : index
      %c0_22 = arith.constant 0 : index
      %c0_23 = arith.constant 0 : index
      %14 = vector.load %arg7[%c0_21, %c0_22, %c0_23] : memref<1x1x128xf32, #tpu.memory_space<vmem>>, vector<1x1x32xf32>
      tpu.vector_store %arg7[%c0_21, %c0_22, %c0_23], %12 {strides = array<i32>} : memref<1x1x128xf32, #tpu.memory_space<vmem>>, vector<1x1x32xf32>,
      %c0_24 = arith.constant 0 : index
      %c0_25 = arith.constant 0 : index
      %c32 = arith.constant 32 : index
      %15 = vector.load %arg6[%c0_24, %c0_25, %c32] : memref<1x1x128xf32, #tpu.memory_space<vmem>>, vector<1x1x32xf32>
      tpu.vector_store %arg6[%c0_24, %c0_25, %c32], %11 {strides = array<i32>} : memref<1x1x128xf32, #tpu.memory_space<vmem>>, vector<1x1x32xf32>,
      %c0_26 = arith.constant 0 : index
      %c0_27 = arith.constant 0 : index
      %c32_28 = arith.constant 32 : index
      %16 = vector.load %arg7[%c0_26, %c0_27, %c32_28] : memref<1x1x128xf32, #tpu.memory_space<vmem>>, vector<1x1x32xf32>
      tpu.vector_store %arg7[%c0_26, %c0_27, %c32_28], %12 {strides = array<i32>} : memref<1x1x128xf32, #tpu.memory_space<vmem>>, vector<1x1x32xf32>,
      %c0_29 = arith.constant 0 : index
      %c0_30 = arith.constant 0 : index
      %c64 = arith.constant 64 : index
      %17 = vector.load %arg6[%c0_29, %c0_30, %c64] : memref<1x1x128xf32, #tpu.memory_space<vmem>>, vector<1x1x32xf32>
      tpu.vector_store %arg6[%c0_29, %c0_30, %c64], %11 {strides = array<i32>} : memref<1x1x128xf32, #tpu.memory_space<vmem>>, vector<1x1x32xf32>,
      %c0_31 = arith.constant 0 : index
      %c0_32 = arith.constant 0 : index
      %c64_33 = arith.constant 64 : index
      %18 = vector.load %arg7[%c0_31, %c0_32, %c64_33] : memref<1x1x128xf32, #tpu.memory_space<vmem>>, vector<1x1x32xf32>
      tpu.vector_store %arg7[%c0_31, %c0_32, %c64_33], %12 {strides = array<i32>} : memref<1x1x128xf32, #tpu.memory_space<vmem>>, vector<1x1x32xf32>,
      %c0_34 = arith.constant 0 : index
      %c0_35 = arith.constant 0 : index
      %c96 = arith.constant 96 : index
      %19 = vector.load %arg6[%c0_34, %c0_35, %c96] : memref<1x1x128xf32, #tpu.memory_space<vmem>>, vector<1x1x32xf32>
      tpu.vector_store %arg6[%c0_34, %c0_35, %c96], %11 {strides = array<i32>} : memref<1x1x128xf32, #tpu.memory_space<vmem>>, vector<1x1x32xf32>,
      %c0_36 = arith.constant 0 : index
      %c0_37 = arith.constant 0 : index
      %c96_38 = arith.constant 96 : index
      %20 = vector.load %arg7[%c0_36, %c0_37, %c96_38] : memref<1x1x128xf32, #tpu.memory_space<vmem>>, vector<1x1x32xf32>
      tpu.vector_store %arg7[%c0_36, %c0_37, %c96_38], %12 {strides = array<i32>} : memref<1x1x128xf32, #tpu.memory_space<vmem>>, vector<1x1x32xf32>,
    } else {
    }
    %c0 = arith.constant 0 : index
    %c0_1 = arith.constant 0 : index
    %c0_2 = arith.constant 0 : index
    %3 = vector.load %arg2[%c0, %c0_1, %c0_2] : memref<1x16x128xf32, #tpu.memory_space<vmem>>, vector<1x16x128xf32>
    %c0_3 = arith.constant 0 : index
    %c0_4 = arith.constant 0 : index
    %c0_5 = arith.constant 0 : index
    %4 = vector.load %arg6[%c0_3, %c0_4, %c0_5] : memref<1x1x128xf32, #tpu.memory_space<vmem>>, vector<1x1x128xf32>
    %5 = vector.broadcast %4 : vector<1x1x128xf32> to vector<1x16x128xf32>
    %6 = arith.mulf %3, %5 : vector<1x16x128xf32>
    %c0_6 = arith.constant 0 : index
    %c0_7 = arith.constant 0 : index
    %c0_8 = arith.constant 0 : index
    %7 = vector.load %arg7[%c0_6, %c0_7, %c0_8] : memref<1x1x128xf32, #tpu.memory_space<vmem>>, vector<1x1x128xf32>
    %8 = vector.broadcast %7 : vector<1x1x128xf32> to vector<1x16x128xf32>
    %9 = arith.addf %6, %8 : vector<1x16x128xf32>
    %c0_9 = arith.constant 0 : index
    %c0_10 = arith.constant 0 : index
    %c0_11 = arith.constant 0 : index
    %10 = vector.load %arg5[%c0_9, %c0_10, %c0_11] : memref<1x16x128xf32, #tpu.memory_space<vmem>>, vector<1x16x128xf32>
    tpu.vector_store %arg5[%c0_9, %c0_10, %c0_11], %9 {strides = array<i32>} : memref<1x16x128xf32, #tpu.memory_space<vmem>>, vector<1x16x128xf32>,
    return
  }
  func.func @transform_0(%arg0: i32, %arg1: i32) -> (i32, i32, i32) {
    %c0_i32 = arith.constant 0 : i32
    %c0_i32_0 = arith.constant 0 : i32
    return %arg0, %arg1, %c0_i32 : i32, i32, i32
  }
  func.func @transform_1(%arg0: i32, %arg1: i32) -> (i32, i32, i32) {
    %c0_i32 = arith.constant 0 : i32
    %c0_i32_0 = arith.constant 0 : i32
    %c0_i32_1 = arith.constant 0 : i32
    return %arg0, %c0_i32, %c0_i32_0 : i32, i32, i32
  }
  func.func @transform_2(%arg0: i32, %arg1: i32) -> (i32, i32, i32) {
    %c0_i32 = arith.constant 0 : i32
    %c0_i32_0 = arith.constant 0 : i32
    %c0_i32_1 = arith.constant 0 : i32
    return %arg0, %c0_i32, %c0_i32_0 : i32, i32, i32
  }
  func.func @transform_3(%arg0: i32, %arg1: i32) -> (i32, i32, i32) {
    %c0_i32 = arith.constant 0 : i32
    %c0_i32_0 = arith.constant 0 : i32
    return %arg0, %arg1, %c0_i32 : i32, i32, i32
  }
}

</mosaic_0001>

<bundles_post_ra>
// kernel: metalm_layer.1
= control target key start
LH: loop header
LB: loop body
LE: loop exit
PB: predicated region body
PF: predicated region fallthrough
CT: control target
= control target key end

     0   :  { %s500_s12 = smov 0   ;;  %s502_s13 = smov 0   ;;  %s544_s0 = inlined_call_operand.vmem [shape: f32[2,16,128], index: 0, kind: input, shape index: {}]   ;;  %s545_s1 = inlined_call_operand.vmem [shape: f32[2,1,32], index: 1, kind: input, shape index: {}]   ;;  %s546_s2 = inlined_call_operand.vmem [shape: f32[2,1,32], index: 2, kind: input, shape index: {}]   ;;  %s547_s3 = inlined_call_operand.vmem [shape: f32[2,16,128], index: 3, kind: output, shape index: {}]  }
   0x1   :  { %s504_s14 = smov 0  }
   0x2 LB: > { %s25_s15 = sadd.s32 1, %s471_s13  ;;  %p415_p0 = scmp.ge.s32.totalorder %s475_s14, 1  ;;  %s475_s14 = sphi %s504_s14, %s13_s14   ;;  %s471_s13 = sphi %s502_s13, %s549_s13   ;;  %s467_s12 = sphi %s500_s12, %s548_s12  }
   0x3   : > { %p27_p1 = scmp.ge.s32.totalorder %s25_s15, 2  ;;  %p174_p2 = scmp.lt.s32.totalorder %s475_s14, 3 }
   0x5   : > { %s551_s15 = smov (%p27_p1, %s25_s15), 0  ;;  %p175_p3 = pnand %p415_p0, %p174_p2 }
   0x6   : > { %p213_p4 = scmp.lt.s32.totalorder (!%p175_p3), %s467_s12, 1  ;;  %s477_s22 = smov (!%p175_p3), 32  }
   0x7   : > { %178 = sbr.rel (%p175_p3) target bundleno = 155 (0x9b), region = 32  ;;  %s478_s23 = smov (!%p175_p3), 64  }
   0x8   : > { %s479_s24 = smov (!%p175_p3), 96  }
   0xc   : > { %v248_v0 = vlaneseq  ;;  %s553_s12 = smov (!%p213_p4, %s467_s12), 1  ;;  %vm244_vm0 = vcmask 253952   ;;  %vm255_vm1 = vcmask 516352   ;;  %vm269_vm2 = vcmask 778752  }
   0xd   : > { %s224_s18 = scalar_lea.vmem %s545_s1, %s553_s12  ;;  %s227_s21 = scalar_lea.vmem %s546_s2, %s553_s12  ;;  %vm278_vm3 = vcmask 1041152  }
   0xe   : > { %v249_v1 = vshrl.u32 %v248_v0, 7  ;;  %v242_v3 = vld [vmem:[%s224_s18] sm:$0x1]  ;;  %s424_s25 = sshll.u32 %s553_s12, 4 }
   0xf   : > { %245 = vst.msk [vmem:[#allocation2] sm:$0x1] %vm244_vm0, %v242_v3  ;;  %v243_v5 = vld [vmem:[%s227_s21] sm:$0x1]  ;;  %s220_s28 = scalar_lea.vmem %s544_s0, %s424_s25  ;;  %s236_s4 = scalar_lea.vmem %s547_s3, %s424_s25 }
  0x10   : > { %v250_v2 = vsub.s32 0, %v249_v1  ;;  %246 = vst.msk [vmem:[#allocation3] sm:$0x1] %vm244_vm0, %v243_v5  ;;  %v284_v13 = vld [vmem:[%s220_s28] sm:$0xff]  ;;  %v285_v14 = vld [vmem:[%s220_s28 + $0x8] sm:$0xff] }
  0x12   : > { %v251_v4 = vrot.slane %v242_v3, %v250_v2  ;;  %v261_v6 = vrot.slane %v243_v5, %v250_v2 }
  0x14   : > { %252 = vrot.lane.b32.xlu0 %v251_v4, %s477_s22  ;;  %262 = vrot.lane.b32.xlu1 %v261_v6, %s477_s22 }
  0x18   : > { %266 = vrot.lane.b32.xlu0 %v251_v4, %s478_s23  ;;  %275 = vrot.lane.b32.xlu1 %v251_v4, %s479_s24 }
  0x1c   : > { %271 = vrot.lane.b32.xlu0 %v261_v6, %s478_s23  ;;  %280 = vrot.lane.b32.xlu1 %v261_v6, %s479_s24 }
  0x86   : > { %v253_v7 = vpop.permute.xlu0 %252  ;;  %v263_v8 = vpop.permute.xlu1 %262 }
  0x87   : > { %256 = vst.msk [vmem:[#allocation2] sm:$0x1] %vm255_vm1, %v253_v7  ;;  %265 = vst.msk [vmem:[#allocation3] sm:$0x1] %vm255_vm1, %v263_v8 }
  0x8a   : > { %v267_v9 = vpop.permute.xlu0 %266  ;;  %v276_v10 = vpop.permute.xlu1 %275 }
  0x8b   : > { %270 = vst.msk [vmem:[#allocation2] sm:$0x1] %vm269_vm2, %v267_v9 }
  0x8c   : > { %279 = vst.msk [vmem:[#allocation2] sm:$0x1] %vm278_vm3, %v276_v10 }
  0x8e   : > { %v272_v11 = vpop.permute.xlu0 %271  ;;  %v281_v12 = vpop.permute.xlu1 %280 }
  0x8f   : > { %274 = vst.msk [vmem:[#allocation3] sm:$0x1] %vm269_vm2, %v272_v11 }
  0x90   : > { %283 = vst.msk [vmem:[#allocation3] sm:$0x1] %vm278_vm3, %v281_v12 }
  0x93   : > { %v420_v15 = vld [vmem:[#allocation2] ss:$0 sm:$0xff] }
  0x94   : > { %v293_v16 = vmul.f32 %v420_v15, %v284_v13  ;;  %v294_v17 = vmul.f32 %v420_v15, %v285_v14 }
  0x97   : > { %v421_v18 = vld [vmem:[#allocation3] ss:$0 sm:$0xff] }
  0x98   : > { %v302_v19 = vadd.f32 %v421_v18, %v293_v16  ;;  %v303_v20 = vadd.f32 %v421_v18, %v294_v17 }
  0x9a   : > { %304 = vst [vmem:[%s236_s4] sm:$0xff] %v302_v19  ;;  %305 = vst [vmem:[%s236_s4 + $0x8] sm:$0xff] %v303_v20 }
  0x9b PF: > { %s13_s14 = sadd.s32 1, %s475_s14   ;;  %s548_s12 = smov %s471_s13 }
  0x9c   : > { %p10_p5 = scmp.ge.s32.totalorder %s13_s14, 4   ;;  %s549_s13 = smov %s551_s15 }
  0x9e   :  { %12 = sbr.rel (!%p10_p5) target bundleno = 2 (0x2), region = 72 }

</bundles_post_ra>
